<compile_context>
chip_gen: v6e
topology: v6e:2x2x1
jax: 0.10.0
libtpu: 0.0.40
codegen_flags: <defaults>
</compile_context>

<pallas_src>
from functools import partial

import jax
import jax.numpy as jnp
from jax.experimental import pallas as pl
from jax.experimental.pallas import tpu as pltpu

EPS = 1e-5
LANE = 128


# ----------------------------------------------------------------------------- kernel
def _policy_kernel(x_ref, w1_ref, w2_ref, w3_ref, vec_ref, o_ref):
    x = x_ref[...]                       # (B, S)    f32
    w1 = w1_ref[...]                     # (S, 128)
    w2 = w2_ref[...]                     # (128, 128)
    w3 = w3_ref[...]                     # (128, 128)

    # Packed parameter tile: one (8, 128) VMEM block; static row slices are free.
    b1 = vec_ref[0:1, :]
    g1 = vec_ref[1:2, :]
    be1 = vec_ref[2:3, :]
    b2 = vec_ref[3:4, :]
    g2 = vec_ref[4:5, :]
    be2 = vec_ref[5:6, :]
    b3 = vec_ref[6:7, :]

    inv_b = 1.0 / x.shape[0]

    def batchnorm(h, gamma, beta):
        # Two-pass (centered) biased variance -- matches BatchNorm1d with
        # track_running_stats=False and avoids E[h^2]-mu^2 cancellation.
        mu = jnp.sum(h, axis=0, keepdims=True) * inv_b          # (1, 128)
        centered = h - mu                                       # (B, 128)
        var = jnp.sum(centered * centered, axis=0, keepdims=True) * inv_b
        # Per-feature scale computed on the (1,128) row: rsqrt/EUP stays off the
        # per-element path; per-element work is just mul + add.
        scale = gamma * jax.lax.rsqrt(var + EPS)                # (1, 128)
        return centered * scale + beta

    # --- Linear(S, H) + ReLU + BN ---
    h = jnp.maximum(jnp.dot(x, w1, preferred_element_type=jnp.float32) + b1, 0.0)
    h = batchnorm(h, g1, be1)

    # --- Linear(H, H) + ReLU + BN ---
    h = jnp.maximum(jnp.dot(h, w2, preferred_element_type=jnp.float32) + b2, 0.0)
    h = batchnorm(h, g2, be2)

    # --- Linear(H, A) + Sigmoid : lane-dense (B, 128) store ---
    logits = jnp.dot(h, w3, preferred_element_type=jnp.float32) + b3
    o_ref[...] = jax.nn.sigmoid(logits)


# ----------------------------------------------------------------------------- packing (call ONCE at init)
def pack_params(params):
    """Zero-pad feature dims to the 128-lane width and pack the small vectors
    (b1,g1,be1,b2,g2,be2,b3) into one (8, 128) tile.

    Call this ONCE when parameters are created/updated (not per forward call)."""
    S, H = params["w1"].shape
    A = params["w3"].shape[1]
    assert H <= LANE and A <= LANE, "this packing assumes hidden_dim, action_dim <= 128"
    HP = LANE

    def padc(v):  # (1, n) -> (128,)
        return jnp.pad(v[0], (0, HP - v.shape[1]))

    w1 = jnp.pad(params["w1"], ((0, 0), (0, HP - H)))          # (S, 128)
    w2 = jnp.pad(params["w2"], ((0, HP - H), (0, HP - H)))     # (128, 128)
    w3 = jnp.pad(params["w3"], ((0, HP - H), (0, HP - A)))     # (128, 128)
    vec = jnp.stack([
        padc(params["b1"]), padc(params["g1"]), padc(params["be1"]),
        padc(params["b2"]), padc(params["g2"]), padc(params["be2"]),
        padc(params["b3"]), jnp.zeros((HP,), jnp.float32),
    ])                                                         # (8, 128)
    return w1, w2, w3, vec


# ----------------------------------------------------------------------------- forward
@partial(jax.jit, static_argnames=("action_dim",))
def policy_forward(x, w1, w2, w3, vec, *, action_dim):
    """Forward pass.

    x: (B, state_dim) f32 for one batch, or (N, B, state_dim) f32 for N
       independent batches evaluated in ONE pallas_call (dispatch amortization;
       BatchNorm statistics are computed per (B,·) batch, as in PyTorch).
    w1, w2, w3, vec: packed arrays from pack_params() (hoisted out of this path).
    """
    squeeze = x.ndim == 2
    xs = x[None] if squeeze else x
    N, B, S = xs.shape
    HP = w1.shape[1]

    flops = 2 * N * B * (S * HP + HP * HP + HP * HP)
    bytes_accessed = 4 * (xs.size + w1.size + w2.size + w3.size + vec.size + N * B * HP)
    cost = pl.CostEstimate(
        flops=flops,
        transcendentals=N * (B * HP + 2 * HP),   # sigmoid tile + 2x rsqrt rows per instance
        bytes_accessed=bytes_accessed,
    )

    out_padded = pl.pallas_call(
        _policy_kernel,
        out_shape=jax.ShapeDtypeStruct((N, B, HP), jnp.float32),
        grid=(N,),
        in_specs=[
            # per-instance activation block (leading axis squeezed away)
            pl.BlockSpec((None, B, S), lambda n: (n, 0, 0)),
            # weights/params: constant block index -> resident across grid steps
            pl.BlockSpec((S, HP), lambda n: (0, 0)),
            pl.BlockSpec((HP, HP), lambda n: (0, 0)),
            pl.BlockSpec((HP, HP), lambda n: (0, 0)),
            pl.BlockSpec((8, HP), lambda n: (0, 0)),
        ],
        out_specs=pl.BlockSpec((None, B, HP), lambda n: (n, 0, 0)),
        compiler_params=pltpu.CompilerParams(
            # independent instances -> shard across v7x's two TensorCores
            dimension_semantics=("parallel",),
            vmem_limit_bytes=32 * 1024 * 1024,
        ),
        cost_estimate=cost,
    )(xs, w1, w2, w3, vec)

    out = out_padded[..., :action_dim]          # drop zero-padded action lanes
    return out[0] if squeeze else out


# ----------------------------------------------------------------------------- init + pure-JAX reference
def _xavier_uniform(key, fan_in, fan_out):
    # torch.nn.init.xavier_uniform_ with gain=1: U(-a, a), a = sqrt(6/(fan_in+fan_out))
    a = (6.0 / (fan_in + fan_out)) ** 0.5
    # weight stored as (in, out), i.e. transpose of torch's (out, in)
    return jax.random.uniform(key, (fan_in, fan_out), jnp.float32, minval=-a, maxval=a)


def init_params(key, state_dim, action_dim, hidden_dim):
    k1, k2, k3 = jax.random.split(key, 3)
    H = hidden_dim
    return {
        "w1": _xavier_uniform(k1, state_dim, H),
        "b1": jnp.zeros((1, H), jnp.float32),
        "g1": jnp.ones((1, H), jnp.float32),     # BatchNorm1d affine weight (init 1)
        "be1": jnp.zeros((1, H), jnp.float32),   # BatchNorm1d affine bias   (init 0)
        "w2": _xavier_uniform(k2, H, H),
        "b2": jnp.zeros((1, H), jnp.float32),
        "g2": jnp.ones((1, H), jnp.float32),
        "be2": jnp.zeros((1, H), jnp.float32),
        "w3": _xavier_uniform(k3, H, action_dim),
        "b3": jnp.zeros((1, action_dim), jnp.float32),
    }


def policy_forward_ref(x, params):
    """Pure-JAX reference (two-pass BN variance) for correctness checking."""
    h = jnp.maximum(x @ params["w1"] + params["b1"], 0.0)
    mu = h.mean(0, keepdims=True)
    var = ((h - mu) ** 2).mean(0, keepdims=True)
    h = (h - mu) / jnp.sqrt(var + EPS) * params["g1"] + params["be1"]
    h = jnp.maximum(h @ params["w2"] + params["b2"], 0.0)
    mu = h.mean(0, keepdims=True)
    var = ((h - mu) ** 2).mean(0, keepdims=True)
    h = (h - mu) / jnp.sqrt(var + EPS) * params["g2"] + params["be2"]
    return jax.nn.sigmoid(h @ params["w3"] + params["b3"])


if __name__ == "__main__":
    key = jax.random.PRNGKey(0)
    kx, kxs, kp = jax.random.split(key, 3)

    B, STATE_DIM, ACTION_DIM, HIDDEN_DIM = 8, 4, 2, 32
    N = 4   # number of independent forwards amortized into one pallas_call

    params = init_params(kp, STATE_DIM, ACTION_DIM, HIDDEN_DIM)
    # Pack/pad ONCE at init (hoisted out of the per-call path).
    w1p, w2p, w3p, vecp = pack_params(params)

    # --- single batch (grid of 1) ---
    x = jax.random.normal(kx, (B, STATE_DIM), jnp.float32)
    out = policy_forward(x, w1p, w2p, w3p, vecp, action_dim=ACTION_DIM)
    out = jax.block_until_ready(out)
    ref = policy_forward_ref(x, params)
    assert out.shape == (B, ACTION_DIM)
    assert jnp.max(jnp.abs(out - ref)) < 1e-5, "single-batch mismatch vs reference"

    # --- N independent batches in ONE pallas_call (dispatch amortization) ---
    xs = jax.random.normal(kxs, (N, B, STATE_DIM), jnp.float32)
    outs = policy_forward(xs, w1p, w2p, w3p, vecp, action_dim=ACTION_DIM)
    outs = jax.block_until_ready(outs)
    refs = jax.vmap(lambda xi: policy_forward_ref(xi, params))(xs)
    assert outs.shape == (N, B, ACTION_DIM)
    assert jnp.max(jnp.abs(outs - refs)) < 1e-5, "batched mismatch vs reference"

    print("KERNEL_OK")
</pallas_src>

<mosaic_0001>
module attributes {stable_mosaic.version = 11 : i64} {
  func.func @_policy_kernel(%arg0: i32, %arg1: memref<1x8x4xf32, #tpu.memory_space<vmem>>, %arg2: memref<4x128xf32, #tpu.memory_space<vmem>>, %arg3: memref<128x128xf32, #tpu.memory_space<vmem>>, %arg4: memref<128x128xf32, #tpu.memory_space<vmem>>, %arg5: memref<8x128xf32, #tpu.memory_space<vmem>>, %arg6: memref<1x8x128xf32, #tpu.memory_space<vmem>>) attributes {dimension_semantics = [#tpu.dimension_semantics<parallel>], iteration_bounds = array<i64: 1>, scalar_prefetch = 0 : i64, scratch_operands = 0 : i64, tpu.core_type = #tpu.core_type<tc>, window_params = [{transform_indices = @transform_0, window_bounds = array<i64: 1, 8, 4>}, {pipeline_mode = #tpu.pipeline_mode<synchronous>, transform_indices = @transform_1, window_bounds = array<i64: 4, 128>}, {pipeline_mode = #tpu.pipeline_mode<synchronous>, transform_indices = @transform_2, window_bounds = array<i64: 128, 128>}, {pipeline_mode = #tpu.pipeline_mode<synchronous>, transform_indices = @transform_3, window_bounds = array<i64: 128, 128>}, {pipeline_mode = #tpu.pipeline_mode<synchronous>, transform_indices = @transform_4, window_bounds = array<i64: 8, 128>}, {transform_indices = @transform_5, window_bounds = array<i64: 1, 8, 128>}]} {
    %c0 = arith.constant 0 : index
    %c0_0 = arith.constant 0 : index
    %c0_1 = arith.constant 0 : index
    %0 = vector.load %arg1[%c0, %c0_0, %c0_1] : memref<1x8x4xf32, #tpu.memory_space<vmem>>, vector<1x8x4xf32>
    %1 = vector.shape_cast %0 : vector<1x8x4xf32> to vector<8x4xf32>
    %c0_2 = arith.constant 0 : index
    %c0_3 = arith.constant 0 : index
    %2 = vector.load %arg2[%c0_2, %c0_3] : memref<4x128xf32, #tpu.memory_space<vmem>>, vector<4x128xf32>
    %c0_4 = arith.constant 0 : index
    %c0_5 = arith.constant 0 : index
    %3 = vector.load %arg3[%c0_4, %c0_5] : memref<128x128xf32, #tpu.memory_space<vmem>>, vector<128x128xf32>
    %c0_6 = arith.constant 0 : index
    %c0_7 = arith.constant 0 : index
    %4 = vector.load %arg4[%c0_6, %c0_7] : memref<128x128xf32, #tpu.memory_space<vmem>>, vector<128x128xf32>
    %c0_8 = arith.constant 0 : index
    %c0_9 = arith.constant 0 : index
    %5 = vector.load %arg5[%c0_8, %c0_9] : memref<8x128xf32, #tpu.memory_space<vmem>>, vector<1x128xf32>
    %c1 = arith.constant 1 : index
    %c0_10 = arith.constant 0 : index
    %6 = vector.load %arg5[%c1, %c0_10] : memref<8x128xf32, #tpu.memory_space<vmem>>, vector<1x128xf32>
    %c2 = arith.constant 2 : index
    %c0_11 = arith.constant 0 : index
    %7 = vector.load %arg5[%c2, %c0_11] : memref<8x128xf32, #tpu.memory_space<vmem>>, vector<1x128xf32>
    %c3 = arith.constant 3 : index
    %c0_12 = arith.constant 0 : index
    %8 = vector.load %arg5[%c3, %c0_12] : memref<8x128xf32, #tpu.memory_space<vmem>>, vector<1x128xf32>
    %c4 = arith.constant 4 : index
    %c0_13 = arith.constant 0 : index
    %9 = vector.load %arg5[%c4, %c0_13] : memref<8x128xf32, #tpu.memory_space<vmem>>, vector<1x128xf32>
    %c5 = arith.constant 5 : index
    %c0_14 = arith.constant 0 : index
    %10 = vector.load %arg5[%c5, %c0_14] : memref<8x128xf32, #tpu.memory_space<vmem>>, vector<1x128xf32>
    %c6 = arith.constant 6 : index
    %c0_15 = arith.constant 0 : index
    %11 = vector.load %arg5[%c6, %c0_15] : memref<8x128xf32, #tpu.memory_space<vmem>>, vector<1x128xf32>
    %cst = arith.constant dense<0.000000e+00> : vector<8x128xf32>
    %12 = tpu.matmul %1, %2, %cst {dimension_numbers = #tpu.dot_dimension_numbers<[1], [0], [0], [1], [0, 0, 1, 1], [], []>} : vector<8x4xf32>, vector<4x128xf32>, vector<8x128xf32> -> vector<8x128xf32>
    %13 = vector.broadcast %5 : vector<1x128xf32> to vector<8x128xf32>
    %14 = arith.addf %12, %13 : vector<8x128xf32>
    %cst_16 = arith.constant 0.000000e+00 : f32
    %15 = vector.broadcast %cst_16 : f32 to vector<8x128xf32>
    %16 = arith.maximumf %14, %15 : vector<8x128xf32>
    %cst_17 = arith.constant dense<0.000000e+00> : vector<128xf32>
    %17 = vector.multi_reduction <add>, %16, %cst_17 [0] : vector<8x128xf32> to vector<128xf32>
    %18 = vector.shape_cast %17 : vector<128xf32> to vector<1x128xf32>
    %cst_18 = arith.constant 1.250000e-01 : f32
    %19 = vector.broadcast %cst_18 : f32 to vector<1x128xf32>
    %20 = arith.mulf %18, %19 : vector<1x128xf32>
    %21 = vector.broadcast %20 : vector<1x128xf32> to vector<8x128xf32>
    %22 = arith.subf %16, %21 : vector<8x128xf32>
    %23 = arith.mulf %22, %22 : vector<8x128xf32>
    %cst_19 = arith.constant dense<0.000000e+00> : vector<128xf32>
    %24 = vector.multi_reduction <add>, %23, %cst_19 [0] : vector<8x128xf32> to vector<128xf32>
    %25 = vector.shape_cast %24 : vector<128xf32> to vector<1x128xf32>
    %cst_20 = arith.constant 1.250000e-01 : f32
    %26 = vector.broadcast %cst_20 : f32 to vector<1x128xf32>
    %27 = arith.mulf %25, %26 : vector<1x128xf32>
    %cst_21 = arith.constant 9.99999974E-6 : f32
    %28 = vector.broadcast %cst_21 : f32 to vector<1x128xf32>
    %29 = arith.addf %27, %28 : vector<1x128xf32>
    %30 = math.rsqrt %29 : vector<1x128xf32>
    %31 = arith.mulf %6, %30 : vector<1x128xf32>
    %32 = vector.broadcast %31 : vector<1x128xf32> to vector<8x128xf32>
    %33 = arith.mulf %22, %32 : vector<8x128xf32>
    %34 = vector.broadcast %7 : vector<1x128xf32> to vector<8x128xf32>
    %35 = arith.addf %33, %34 : vector<8x128xf32>
    %cst_22 = arith.constant dense<0.000000e+00> : vector<8x128xf32>
    %36 = tpu.matmul %35, %3, %cst_22 {dimension_numbers = #tpu.dot_dimension_numbers<[1], [0], [0], [1], [0, 0, 1, 1], [], []>} : vector<8x128xf32>, vector<128x128xf32>, vector<8x128xf32> -> vector<8x128xf32>
    %37 = vector.broadcast %8 : vector<1x128xf32> to vector<8x128xf32>
    %38 = arith.addf %36, %37 : vector<8x128xf32>
    %cst_23 = arith.constant 0.000000e+00 : f32
    %39 = vector.broadcast %cst_23 : f32 to vector<8x128xf32>
    %40 = arith.maximumf %38, %39 : vector<8x128xf32>
    %cst_24 = arith.constant dense<0.000000e+00> : vector<128xf32>
    %41 = vector.multi_reduction <add>, %40, %cst_24 [0] : vector<8x128xf32> to vector<128xf32>
    %42 = vector.shape_cast %41 : vector<128xf32> to vector<1x128xf32>
    %cst_25 = arith.constant 1.250000e-01 : f32
    %43 = vector.broadcast %cst_25 : f32 to vector<1x128xf32>
    %44 = arith.mulf %42, %43 : vector<1x128xf32>
    %45 = vector.broadcast %44 : vector<1x128xf32> to vector<8x128xf32>
    %46 = arith.subf %40, %45 : vector<8x128xf32>
    %47 = arith.mulf %46, %46 : vector<8x128xf32>
    %cst_26 = arith.constant dense<0.000000e+00> : vector<128xf32>
    %48 = vector.multi_reduction <add>, %47, %cst_26 [0] : vector<8x128xf32> to vector<128xf32>
    %49 = vector.shape_cast %48 : vector<128xf32> to vector<1x128xf32>
    %cst_27 = arith.constant 1.250000e-01 : f32
    %50 = vector.broadcast %cst_27 : f32 to vector<1x128xf32>
    %51 = arith.mulf %49, %50 : vector<1x128xf32>
    %cst_28 = arith.constant 9.99999974E-6 : f32
    %52 = vector.broadcast %cst_28 : f32 to vector<1x128xf32>
    %53 = arith.addf %51, %52 : vector<1x128xf32>
    %54 = math.rsqrt %53 : vector<1x128xf32>
    %55 = arith.mulf %9, %54 : vector<1x128xf32>
    %56 = vector.broadcast %55 : vector<1x128xf32> to vector<8x128xf32>
    %57 = arith.mulf %46, %56 : vector<8x128xf32>
    %58 = vector.broadcast %10 : vector<1x128xf32> to vector<8x128xf32>
    %59 = arith.addf %57, %58 : vector<8x128xf32>
    %cst_29 = arith.constant dense<0.000000e+00> : vector<8x128xf32>
    %60 = tpu.matmul %59, %4, %cst_29 {dimension_numbers = #tpu.dot_dimension_numbers<[1], [0], [0], [1], [0, 0, 1, 1], [], []>} : vector<8x128xf32>, vector<128x128xf32>, vector<8x128xf32> -> vector<8x128xf32>
    %61 = vector.broadcast %11 : vector<1x128xf32> to vector<8x128xf32>
    %62 = arith.addf %60, %61 : vector<8x128xf32>
    %63 = arith.negf %62 : vector<8x128xf32>
    %64 = math.exp %63 : vector<8x128xf32>
    %cst_30 = arith.constant 1.000000e+00 : f32
    %65 = vector.broadcast %cst_30 : f32 to vector<8x128xf32>
    %66 = arith.addf %65, %64 : vector<8x128xf32>
    %67 = arith.divf %65, %66 : vector<8x128xf32>
    %c0_31 = arith.constant 0 : index
    %c0_32 = arith.constant 0 : index
    %c0_33 = arith.constant 0 : index
    %68 = vector.load %arg6[%c0_31, %c0_32, %c0_33] : memref<1x8x128xf32, #tpu.memory_space<vmem>>, vector<1x8x128xf32>
    %69 = vector.shape_cast %68 : vector<1x8x128xf32> to vector<8x128xf32>
    %70 = vector.shape_cast %67 : vector<8x128xf32> to vector<1x8x128xf32>
    tpu.vector_store %arg6[%c0_31, %c0_32, %c0_33], %70 {strides = array<i32>} : memref<1x8x128xf32, #tpu.memory_space<vmem>>, vector<1x8x128xf32>,
    return
  }
  func.func @transform_0(%arg0: i32) -> (i32, i32, i32) {
    %c0_i32 = arith.constant 0 : i32
    %c0_i32_0 = arith.constant 0 : i32
    %c0_i32_1 = arith.constant 0 : i32
    return %arg0, %c0_i32, %c0_i32_0 : i32, i32, i32
  }
  func.func @transform_1(%arg0: i32) -> (i32, i32) {
    %c0_i32 = arith.constant 0 : i32
    %c0_i32_0 = arith.constant 0 : i32
    %c0_i32_1 = arith.constant 0 : i32
    return %c0_i32, %c0_i32_0 : i32, i32
  }
  func.func @transform_2(%arg0: i32) -> (i32, i32) {
    %c0_i32 = arith.constant 0 : i32
    %c0_i32_0 = arith.constant 0 : i32
    %c0_i32_1 = arith.constant 0 : i32
    return %c0_i32, %c0_i32_0 : i32, i32
  }
  func.func @transform_3(%arg0: i32) -> (i32, i32) {
    %c0_i32 = arith.constant 0 : i32
    %c0_i32_0 = arith.constant 0 : i32
    %c0_i32_1 = arith.constant 0 : i32
    return %c0_i32, %c0_i32_0 : i32, i32
  }
  func.func @transform_4(%arg0: i32) -> (i32, i32) {
    %c0_i32 = arith.constant 0 : i32
    %c0_i32_0 = arith.constant 0 : i32
    %c0_i32_1 = arith.constant 0 : i32
    return %c0_i32, %c0_i32_0 : i32, i32
  }
  func.func @transform_5(%arg0: i32) -> (i32, i32, i32) {
    %c0_i32 = arith.constant 0 : i32
    %c0_i32_0 = arith.constant 0 : i32
    %c0_i32_1 = arith.constant 0 : i32
    return %arg0, %c0_i32, %c0_i32_0 : i32, i32, i32
  }
}

</mosaic_0001>

<bundles_post_ra>
// kernel: policy_forward.1
= control target key start
LH: loop header
LB: loop body
LE: loop exit
PB: predicated region body
PF: predicated region fallthrough
CT: control target
= control target key end

     0   :  { %10 = vsyncpa [#allocation3], 0  ;;  %s684_s0 = inlined_call_operand.vmem [shape: f32[1,8,4], index: 0, kind: input, shape index: {}]   ;;  %s685_s1 = inlined_call_operand.vmem [shape: f32[4,128], index: 1, kind: input, shape index: {}]   ;;  %s686_s2 = inlined_call_operand.hbm [shape: f32[128,128], index: 2, kind: input, shape index: {}]   ;;  %s687_s3 = inlined_call_operand.hbm [shape: f32[128,128], index: 3, kind: input, shape index: {}]   ;;  %s688_s4 = inlined_call_operand.vmem [shape: f32[8,128], index: 4, kind: input, shape index: {}]   ;;  %s689_s5 = inlined_call_operand.vmem [shape: f32[1,8,128], index: 5, kind: output, shape index: {}]  }
   0x1   :  { %11 = vsyncpa [#allocation5], 0  ;;  %s569_s18 = smov [#allocation2]  }
   0x2   :  { %s21_s19 = sshll.u32 %s569_s18, 4  ;;  %s22_s19 = int_to_ptr.vmem [resolvable:$true] %s21_s19 }
   0x3   :  { %s533_s20 = scalar_lea.vmem %s22_s19, 2048  ;;  %p538_p1 = scmp.lt.s32.totalorder %s22_s19, %s22_s19 }
   0x4   :  { %p534_p0 = scmp.ne.s32.totalorder %s22_s19, %s533_s20  ;;  %p539_p2 = scmp.lt.s32.totalorder %s533_s20, %s533_s20 }
   0x6   :  { %p540_p3 = por %p539_p2, %p538_p1 }
   0x8   :  { %p541_p4 = pnand %p540_p3, %p534_p0 }
   0xa   :  { %544 = shalt.err (!%p541_p4)
}
   0xb   :  { %s570_s21 = smov 128   ;;  %s571_s22 = smov 8  }
   0xc   :  { %27 = dma.hbm_to_vmem [thread:$0]  %s686_s2, 2048, %s22_s19, [#allocation3], %s570_s21, %s570_s21, %s571_s22  }
   0xd   :  { %s572_s25 = smov [#allocation4]  }
   0xe   :  { %s33_s26 = sshll.u32 %s572_s25, 4  ;;  %s34_s26 = int_to_ptr.vmem [resolvable:$true] %s33_s26 }
   0xf   :  { %s553_s27 = scalar_lea.vmem %s34_s26, 2048  ;;  %p558_p6 = scmp.lt.s32.totalorder %s34_s26, %s34_s26 }
  0x10   :  { %p554_p5 = scmp.ne.s32.totalorder %s34_s26, %s553_s27  ;;  %p559_p7 = scmp.lt.s32.totalorder %s553_s27, %s553_s27 }
  0x12   :  { %p560_p8 = por %p559_p7, %p558_p6 }
  0x14   :  { %p561_p9 = pnand %p560_p8, %p554_p5 }
  0x16   :  { %564 = shalt.err (!%p561_p9)
}
  0x17   :  { %39 = dma.hbm_to_vmem [thread:$0]  %s687_s3, 2048, %s34_s26, [#allocation5], %s570_s21, %s570_s21, %s571_s22  }
  0x18   :  { %565 = dma.done.wait [#allocation3], 2048  }
  0x19   :  { %566 = vsyncadd [#allocation3], 4294965248 }
  0x1a   :  { %567 = dma.done.wait [#allocation5], 2048  }
  0x1b   :  { %568 = vsyncadd [#allocation5], 4294965248  ;;  %v573_v0 = vmov 0.0   ;;  %vm574_vm0 = vmmov 0   ;;  %vm97_vm1 = vcmask 1043456   ;;  %vm93_vm2 = vcmask 31744  }
  0x1c   :  { %436 = vmatprep.subr.mxu0 %v573_v0  ;;  %438 = vmatprep.mubr.msk.f32.mxu0 %vm574_vm0, %v573_v0  ;;  %v49_v1 = vld [vmem:[%s685_s1] sm:$0xf]  ;;  %v65_v3 = vld [vmem:[#allocation2 + $0x78] sm:$0xff]  ;;  %v64_v4 = vld [vmem:[#allocation2 + $0x70] sm:$0xff]  ;;  %v191_v41 = vlaneseq }
  0x1d   :  { %441 = vmatprep.subr.mxu1 %v573_v0  ;;  %473 = vmatprep.mubr.msk.f32.mxu1 %vm574_vm0, %v573_v0  ;;  %v48_v2 = vld [vmem:[%s684_s0] sm:$0xff]  ;;  %v63_v5 = vld [vmem:[#allocation2 + $0x68] sm:$0xff]  ;;  %v61_v7 = vld [vmem:[#allocation2 + $0x58] sm:$0xff] }
  0x1e   :  { %437 = vmatpush3.msk.msra.mxu0 %vm97_vm1, %v49_v1  ;;  %442 = vmatpush3.msra.mxu1 %v65_v3  ;;  %v62_v6 = vld [vmem:[#allocation2 + $0x60] sm:$0xff]  ;;  %v60_v8 = vld [vmem:[#allocation2 + $0x50] sm:$0xff]  ;;  %v59_v9 = vld [vmem:[#allocation2 + $0x48] sm:$0xff]  ;;  %v641_v42 = vshrl.u32 %v191_v41, 7 }
  0x1f   :  { %439 = vmatmul.mubr.msk.f32.vlgmr.msra.gmra.mxu0 %vm93_vm2, %v48_v2  ;;  %476 = vmatprep.subr.mxu0 %v573_v0  ;;  %v58_v10 = vld [vmem:[#allocation2 + $0x40] sm:$0xff]  ;;  %v57_v11 = vld [vmem:[#allocation2 + $0x38] sm:$0xff]  ;;  %v56_v12 = vld [vmem:[#allocation2 + $0x30] sm:$0xff] }
  0x20   :  { %508 = vmatprep.mubr.msk.f32.mxu0 %vm574_vm0, %v573_v0  ;;  %443 = vmatprep.subr.mxu1 %v573_v0  ;;  %v55_v13 = vld [vmem:[#allocation2 + $0x28] sm:$0xff]  ;;  %v54_v14 = vld [vmem:[#allocation2 + $0x20] sm:$0xff]  ;;  %v53_v15 = vld [vmem:[#allocation2 + $0x18] sm:$0xff]  ;;  %v193_v44 = vsub.s32 0, %v641_v42 }
  0x21   :  { %444 = vmatpush3.msra.mxu1 %v64_v4  ;;  %v52_v16 = vld [vmem:[#allocation2 + $0x10] sm:$0xff]  ;;  %v51_v17 = vld [vmem:[#allocation2 + $0x8] sm:$0xff]  ;;  %v50_v18 = vld [vmem:[#allocation2] sm:$0xff] }
  0x22   :  { %445 = vmatprep.subr.mxu1 %v573_v0  ;;  %v392_v19 = vld [vmem:[%s688_s4] ss:$0 sm:$0xff]  ;;  %v83_v43 = vld [vmem:[%s688_s4 + $0x1] sm:$0x1]  ;;  %v395_v48 = vld [vmem:[%s688_s4 + $0x2] ss:$0 sm:$0xff] }
  0x23   :  { %446 = vmatpush3.msra.mxu1 %v63_v5  ;;  %v81_v51 = vld [vmem:[#allocation4 + $0x78] sm:$0xff]  ;;  %v80_v52 = vld [vmem:[#allocation4 + $0x70] sm:$0xff]  ;;  %v79_v53 = vld [vmem:[#allocation4 + $0x68] sm:$0xff] }
  0x24   :  { %447 = vmatprep.subr.mxu1 %v573_v0  ;;  %477 = vmatpush3.msra.mxu0 %v81_v51  ;;  %v78_v54 = vld [vmem:[#allocation4 + $0x60] sm:$0xff]  ;;  %v77_v55 = vld [vmem:[#allocation4 + $0x58] sm:$0xff]  ;;  %v76_v56 = vld [vmem:[#allocation4 + $0x50] sm:$0xff] }
  0x25   :  { %448 = vmatpush3.msra.mxu1 %v62_v6  ;;  %478 = vmatprep.subr.mxu0 %v573_v0  ;;  %v75_v57 = vld [vmem:[#allocation4 + $0x48] sm:$0xff]  ;;  %v74_v58 = vld [vmem:[#allocation4 + $0x40] sm:$0xff]  ;;  %v73_v59 = vld [vmem:[#allocation4 + $0x38] sm:$0xff] }
  0x26   :  { %449 = vmatprep.subr.mxu1 %v573_v0  ;;  %479 = vmatpush3.msra.mxu0 %v80_v52  ;;  %v72_v60 = vld [vmem:[#allocation4 + $0x30] sm:$0xff]  ;;  %v71_v61 = vld [vmem:[#allocation4 + $0x28] sm:$0xff]  ;;  %v70_v62 = vld [vmem:[#allocation4 + $0x20] sm:$0xff] }
  0x27   :  { %450 = vmatpush3.msra.mxu1 %v61_v7  ;;  %480 = vmatprep.subr.mxu0 %v573_v0  ;;  %v69_v63 = vld [vmem:[#allocation4 + $0x18] sm:$0xff]  ;;  %v68_v1 = vld [vmem:[#allocation4 + $0x10] sm:$0xff]  ;;  %v67_v2 = vld [vmem:[#allocation4 + $0x8] sm:$0xff] }
  0x28   :  { %451 = vmatprep.subr.mxu1 %v573_v0  ;;  %481 = vmatpush3.msra.mxu0 %v79_v53  ;;  %v66_v3 = vld [vmem:[#allocation4] sm:$0xff] }
  0x29   :  { %452 = vmatpush3.msra.mxu1 %v60_v8  ;;  %482 = vmatprep.subr.mxu0 %v573_v0  ;;  %v396_v4 = vld [vmem:[%s688_s4 + $0x3] ss:$0 sm:$0xff] }
  0x2a   :  { %453 = vmatprep.subr.mxu1 %v573_v0  ;;  %483 = vmatpush3.msra.mxu0 %v78_v54 }
  0x2b   :  { %454 = vmatpush3.msra.mxu1 %v59_v9  ;;  %484 = vmatprep.subr.mxu0 %v573_v0 }
  0x2c   :  { %455 = vmatprep.subr.mxu1 %v573_v0  ;;  %485 = vmatpush3.msra.mxu0 %v77_v55 }
  0x2d   :  { %456 = vmatpush3.msra.mxu1 %v58_v10  ;;  %486 = vmatprep.subr.mxu0 %v573_v0 }
  0x2e   :  { %457 = vmatprep.subr.mxu1 %v573_v0  ;;  %487 = vmatpush3.msra.mxu0 %v76_v56 }
  0x2f   :  { %458 = vmatpush3.msra.mxu1 %v57_v11  ;;  %488 = vmatprep.subr.mxu0 %v573_v0 }
  0x30   :  { %459 = vmatprep.subr.mxu1 %v573_v0  ;;  %489 = vmatpush3.msra.mxu0 %v75_v57 }
  0x31   :  { %460 = vmatpush3.msra.mxu1 %v56_v12  ;;  %490 = vmatprep.subr.mxu0 %v573_v0 }
  0x32   :  { %461 = vmatprep.subr.mxu1 %v573_v0  ;;  %491 = vmatpush3.msra.mxu0 %v74_v58 }
  0x33   :  { %462 = vmatpush3.msra.mxu1 %v55_v13  ;;  %492 = vmatprep.subr.mxu0 %v573_v0 }
  0x34   :  { %463 = vmatprep.subr.mxu1 %v573_v0  ;;  %493 = vmatpush3.msra.mxu0 %v73_v59 }
  0x35   :  { %464 = vmatpush3.msra.mxu1 %v54_v14  ;;  %494 = vmatprep.subr.mxu0 %v573_v0 }
  0x36   :  { %465 = vmatprep.subr.mxu1 %v573_v0  ;;  %495 = vmatpush3.msra.mxu0 %v72_v60 }
  0x37   :  { %466 = vmatpush3.msra.mxu1 %v53_v15  ;;  %496 = vmatprep.subr.mxu0 %v573_v0 }
  0x38   :  { %467 = vmatprep.subr.mxu1 %v573_v0  ;;  %497 = vmatpush3.msra.mxu0 %v71_v61 }
  0x39   :  { %468 = vmatpush3.msra.mxu1 %v52_v16  ;;  %498 = vmatprep.subr.mxu0 %v573_v0 }
  0x3a   :  { %469 = vmatprep.subr.mxu1 %v573_v0  ;;  %499 = vmatpush3.msra.mxu0 %v70_v62 }
  0x3b   :  { %470 = vmatpush3.msra.mxu1 %v51_v17  ;;  %500 = vmatprep.subr.mxu0 %v573_v0 }
  0x3c   :  { %471 = vmatprep.subr.mxu1 %v573_v0  ;;  %501 = vmatpush3.msra.mxu0 %v69_v63 }
  0x3d   :  { %472 = vmatpush3.msra.mxu1 %v50_v18  ;;  %502 = vmatprep.subr.mxu0 %v573_v0 }
  0x3e   :  { %503 = vmatpush3.msra.mxu0 %v68_v1 }
  0x3f   :  { %504 = vmatprep.subr.mxu0 %v573_v0 }
  0x40   :  { %505 = vmatpush3.msra.mxu0 %v67_v2 }
  0x41   :  { %506 = vmatprep.subr.mxu0 %v573_v0 }
  0x42   :  { %507 = vmatpush3.msra.mxu0 %v66_v3 }
  0xdf   :  { %v167_v20 = vpop.f32.mrf.mxu0 }
  0xe0   :  { %v168_v21 = vadd.f32 %v392_v19, %v167_v20 }
  0xe1   :  { %v440_v22 = vpop.f32.mrf.mxu0 }
  0xe2   :  { %v171_v23 = vmax.f32 %v168_v21, 0.0 }
  0xe4   :  { %v172_v24 = vrot.slane %v171_v23, 4 }
  0xe6   :  { %v173_v25 = vadd.f32 %v172_v24, %v171_v23 }
  0xe8   :  { %v174_v26 = vrot.slane %v173_v25, 2 }
  0xea   :  { %v175_v27 = vadd.f32 %v174_v26, %v173_v25  ;;  %v86_v25 = vld [vmem:[%s688_s4 + $0x4] sm:$0x1] }
  0xec   :  { %v176_v28 = vrot.slane %v175_v27, 1 }
  0xee   :  { %v177_v29 = vadd.f32 %v176_v28, %v175_v27 }
  0xf0   :  { %v178_v30 = vmul.f32 0.125, %v177_v29  ;;  %v397_v29 = vld [vmem:[%s688_s4 + $0x5] ss:$0 sm:$0xff] }
  0xf2   :  { %v179_v31 = vsub.f32 %v171_v23, %v178_v30 }
  0xf4   :  { %v180_v32 = vmul.f32 %v179_v31, %v179_v31 }
  0xf6   :  { %v181_v33 = vrot.slane %v180_v32, 4 }
  0xf8   :  { %v182_v34 = vadd.f32 %v181_v33, %v180_v32  ;;  %v398_v32 = vld [vmem:[%s688_s4 + $0x6] ss:$0 sm:$0xff] }
  0xfa   :  { %v183_v35 = vrot.slane %v182_v34, 2 }
  0xfc   :  { %v184_v36 = vadd.f32 %v183_v35, %v182_v34 }
  0xfe   :  { %v185_v37 = vrot.slane %v184_v36, 1 }
 0x100   :  { %v186_v38 = vadd.f32 %v185_v37, %v184_v36 }
 0x102   :  { %v187_v39 = vmul.f32 0.125, %v186_v38 }
 0x104   :  { %v188_v40 = vadd.f32 1e-05, %v187_v39 }
 0x106   :  { %517 = vrsqrt.f32 %v188_v40 }
 0x113   :  { %v518_v45 = vpop.eup %517 }
 0x114   :  { %v190_v46 = vmul.f32 %v518_v45, %v83_v43 }
 0x116   :  { %v194_v47 = vrot.slane %v190_v46, %v193_v44 }
 0x118   :  { %v195_v49 = vmul.f32 %v194_v47, %v179_v31 }
 0x11a   :  { %v200_v50 = vadd.f32 %v395_v48, %v195_v49 }
 0x11c   :  { %474 = vmatmul.mubr.f32.vlgmr.msra.gmra.mxu1 %v200_v50 }
 0x1dc   :  { %v271_v5 = vpop.f32.mrf.mxu1 }
 0x1dd   :  { %v272_v6 = vadd.f32 %v396_v4, %v271_v5 }
 0x1de   :  { %v475_v7 = vpop.f32.mrf.mxu1 }
 0x1df   :  { %v275_v8 = vmax.f32 %v272_v6, 0.0 }
 0x1e1   :  { %v276_v9 = vrot.slane %v275_v8, 4 }
 0x1e3   :  { %v277_v10 = vadd.f32 %v276_v9, %v275_v8 }
 0x1e5   :  { %v278_v11 = vrot.slane %v277_v10, 2 }
 0x1e7   :  { %v279_v12 = vadd.f32 %v278_v11, %v277_v10 }
 0x1e9   :  { %v280_v13 = vrot.slane %v279_v12, 1 }
 0x1eb   :  { %v281_v14 = vadd.f32 %v280_v13, %v279_v12 }
 0x1ed   :  { %v282_v15 = vmul.f32 0.125, %v281_v14 }
 0x1ef   :  { %v283_v16 = vsub.f32 %v275_v8, %v282_v15 }
 0x1f1   :  { %v284_v17 = vmul.f32 %v283_v16, %v283_v16 }
 0x1f3   :  { %v285_v18 = vrot.slane %v284_v17, 4 }
 0x1f5   :  { %v286_v0 = vadd.f32 %v285_v18, %v284_v17 }
 0x1f7   :  { %v287_v19 = vrot.slane %v286_v0, 2 }
 0x1f9   :  { %v288_v20 = vadd.f32 %v287_v19, %v286_v0 }
 0x1fb   :  { %v289_v21 = vrot.slane %v288_v20, 1 }
 0x1fd   :  { %v290_v22 = vadd.f32 %v289_v21, %v288_v20 }
 0x1ff   :  { %v291_v23 = vmul.f32 0.125, %v290_v22 }
 0x201   :  { %v292_v24 = vadd.f32 1e-05, %v291_v23 }
 0x203   :  { %519 = vrsqrt.f32 %v292_v24 }
 0x210   :  { %v520_v26 = vpop.eup %519 }
 0x211   :  { %v294_v27 = vmul.f32 %v520_v26, %v86_v25 }
 0x213   :  { %v298_v28 = vrot.slane %v294_v27, %v193_v44 }
 0x215   :  { %v299_v30 = vmul.f32 %v298_v28, %v283_v16 }
 0x217   :  { %v304_v31 = vadd.f32 %v397_v29, %v299_v30 }
 0x219   :  { %509 = vmatmul.mubr.f32.vlgmr.msra.gmra.mxu0 %v304_v31 }
 0x2d9   :  { %v375_v33 = vpop.f32.mrf.mxu0 }
 0x2da   :  { %v376_v34 = vadd.f32 %v398_v32, %v375_v33 }
 0x2db   :  { %v510_v35 = vpop.f32.mrf.mxu0 }
 0x2dc   :  { %v399_v36 = vmul.f32 -1.442695, %v376_v34 }
 0x2de   :  { %521 = vpow2.f32 %v399_v36 }
 0x2eb   :  { %v522_v37 = vpop.eup %521 }
 0x2ec   :  { %v382_v38 = vadd.f32 1.0, %v522_v37 }
 0x2ee   :  { %523 = vrcp.f32 %v382_v38 }
 0x2fb   :  { %v524_v39 = vpop.eup %523 }
 0x2fc   :  { %385 = vst [vmem:[%s689_s5] sm:$0xff] %v524_v39 }
 0x2fd   :  { %390 = vsyncpa [#allocation3], 1 }
 0x2fe   :  { %391 = vsyncpa [#allocation5], 1 }

</bundles_post_ra>
